<compile_context>
chip_gen: v5e
topology: v5e:2x2
jax: 0.10.0
libtpu: 0.0.40
codegen_flags: <defaults>
</compile_context>

<pallas_src>
import functools

import jax
import jax.numpy as jnp
from jax.experimental import pallas as pl
from jax.experimental.pallas import tpu as pltpu


# ----------------------------------------------------------------------------
# Pallas kernel: fused Linear -> ReLU -> (Dropout=id) -> Linear
# Grid: (row tiles  [parallel],  hidden tiles  [arbitrary / reduction])
# ----------------------------------------------------------------------------

def _custom_mlp_kernel(x_ref, w1_ref, b1_ref, w2_ref, b2_ref, o_ref, acc_ref):
    k = pl.program_id(1)

    @pl.when(k == 0)
    def _():
        acc_ref[...] = jnp.zeros_like(acc_ref)

    # In-kernel cast: x arrives f32 from HBM, operands go to the MXU as bf16
    # (or f32 in the debug path); accumulation is always f32.
    xk = x_ref[...].astype(w1_ref.dtype)
    h = jnp.dot(xk, w1_ref[...], preferred_element_type=jnp.float32)
    h = jnp.maximum(h + b1_ref[...], 0.0)
    # TODO(synk): nn.Dropout is treated as eval-mode identity (no Bernoulli mask
    # and no 1/(1-p) scaling); train-mode semantics are not reproduced.
    acc_ref[...] += jnp.dot(h.astype(w2_ref.dtype), w2_ref[...],
                            preferred_element_type=jnp.float32)

    @pl.when(k == pl.num_programs(1) - 1)
    def _():
        o_ref[...] = (acc_ref[...] + b2_ref[...]).astype(o_ref.dtype)


def _round_up(x, m):
    return ((x + m - 1) // m) * m


# ----------------------------------------------------------------------------
# One-time weight preparation (hoist out of the per-call forward).
# ----------------------------------------------------------------------------

def prepare_mlp_params(params, *, compute_dtype=jnp.bfloat16, hidden_block=512):
    """Transpose PyTorch-layout weights to (in, out), zero-pad the hidden dim to
    an exact multiple of the hidden tile (multiple of 128), and cast weights to
    the compute dtype.  Padding is numerically exact: padded hidden units give
    relu(0 + 0) = 0 and their W2 rows are zero.  Call ONCE and reuse."""
    W1, b1 = params["W1"], params["b1"]          # (H, K), (H,)   PyTorch layout
    W2, b2 = params["W2"], params["b2"]          # (O, H), (O,)
    H, K = W1.shape
    O = W2.shape[0]

    Hp0 = _round_up(H, 128)
    n_h = pl.cdiv(Hp0, hidden_block)
    th = _round_up(pl.cdiv(Hp0, n_h), 128)       # hidden tile (multiple of 128)
    Hp = th * n_h                                # padded hidden, exact multiple of th

    w1 = jnp.zeros((K, Hp), jnp.float32).at[:, :H].set(W1.T).astype(compute_dtype)
    b1p = jnp.zeros((1, Hp), jnp.float32).at[:, :H].set(b1)
    w2 = jnp.zeros((Hp, O), jnp.float32).at[:H, :].set(W2.T).astype(compute_dtype)
    b2p = b2.reshape(1, O).astype(jnp.float32)
    return {"w1": w1, "b1": b1p, "w2": w2, "b2": b2p,
            "th": int(th), "out_features": int(O)}


# ----------------------------------------------------------------------------
# Forward pass
# ----------------------------------------------------------------------------

def custom_mlp_forward(x, prepared, *, block_m=512):
    """x: (M, num_hiddens) float32 -> (M, output_size) float32."""
    M, K = x.shape
    w1, b1, w2, b2 = prepared["w1"], prepared["b1"], prepared["w2"], prepared["b2"]
    th = prepared["th"]
    O = prepared["out_features"]
    Hp = w1.shape[1]
    n_h = Hp // th

    # Row tile: as large as block_m for roofline, but keep >= 2 grid steps when
    # the batch allows it so both v7x TensorCores get work.  The ragged last
    # tile is handled by the grid (row-independent compute; OOB writes dropped).
    if M <= 8:
        tm = M
    elif M <= block_m:
        tm = _round_up(pl.cdiv(M, 2), 8)
    else:
        tm = block_m
    grid = (pl.cdiv(M, tm), n_h)

    cdt = jnp.dtype(w1.dtype).itemsize

    def tile_bytes(r, c, itemsize):            # (8,128)-padded VMEM footprint
        return _round_up(r, 8) * _round_up(c, 128) * itemsize

    vmem = 2 * (tile_bytes(tm, K, 4) + tile_bytes(K, th, cdt)
                + tile_bytes(1, th, 4) + tile_bytes(th, O, cdt)
                + tile_bytes(1, O, 4) + tile_bytes(tm, O, 4))
    vmem += tile_bytes(tm, O, 4)               # accumulator scratch
    vmem_limit = int(min(max(3 * vmem, 16 * 1024 * 1024), 100 * 1024 * 1024))

    cost = pl.CostEstimate(
        flops=2 * M * Hp * (K + O),
        transcendentals=0,
        bytes_accessed=(M * K * 4 + K * Hp * cdt + Hp * O * cdt
                        + Hp * 4 + O * 4 + M * O * 4),
    )

    return pl.pallas_call(
        _custom_mlp_kernel,
        out_shape=jax.ShapeDtypeStruct((M, O), jnp.float32),
        grid_spec=pltpu.PrefetchScalarGridSpec(
            num_scalar_prefetch=0,
            grid=grid,
            in_specs=[
                pl.BlockSpec((tm, K), lambda i, k: (i, 0)),   # x (f32, cast in-kernel)
                pl.BlockSpec((K, th), lambda i, k: (0, k)),   # W1 hidden tile
                pl.BlockSpec((1, th), lambda i, k: (0, k)),   # b1 hidden tile
                pl.BlockSpec((th, O), lambda i, k: (k, 0)),   # W2 hidden tile
                pl.BlockSpec((1, O), lambda i, k: (0, 0)),    # b2
            ],
            out_specs=pl.BlockSpec((tm, O), lambda i, k: (i, 0)),
            scratch_shapes=[pltpu.VMEM((tm, O), jnp.float32)],
        ),
        compiler_params=pltpu.CompilerParams(
            dimension_semantics=("parallel", "arbitrary"),
            vmem_limit_bytes=vmem_limit,
        ),
        cost_estimate=cost,
    )(x, w1, b1, w2, b2)


# ----------------------------------------------------------------------------
# Parameters (PyTorch nn.Linear default init) and pure-JAX reference
# ----------------------------------------------------------------------------

def init_params(key, num_hiddens, output_size):
    k1, k2, k3, k4 = jax.random.split(key, 4)
    bound = 1.0 / jnp.sqrt(jnp.float32(num_hiddens))
    W1 = jax.random.uniform(k1, (num_hiddens, num_hiddens), jnp.float32, -bound, bound)
    b1 = jax.random.uniform(k2, (num_hiddens,), jnp.float32, -bound, bound)
    W2 = jax.random.uniform(k3, (output_size, num_hiddens), jnp.float32, -bound, bound)
    b2 = jax.random.uniform(k4, (output_size,), jnp.float32, -bound, bound)
    return {"W1": W1, "b1": b1, "W2": W2, "b2": b2}


def custom_mlp_reference(x, params):
    h = jnp.maximum(x @ params["W1"].T + params["b1"], 0.0)
    return h @ params["W2"].T + params["b2"]


# ----------------------------------------------------------------------------
# Demo
# ----------------------------------------------------------------------------

if __name__ == "__main__":
    num_hiddens, output_size = 32, 5
    dropout = 0.5  # eval-mode identity in this forward pass

    key = jax.random.PRNGKey(0)
    kp, kx1, kx2 = jax.random.split(key, 3)
    params = init_params(kp, num_hiddens, output_size)

    # Weight prep hoisted: done ONCE, not per forward call.
    prepared_bf16 = prepare_mlp_params(params, compute_dtype=jnp.bfloat16)
    prepared_f32 = prepare_mlp_params(params, compute_dtype=jnp.float32)  # debug path

    # Shapes the forward implies: the MLP head consumes (batch, num_hiddens).
    x_small = jax.random.normal(kx1, (2, num_hiddens), jnp.float32)
    # Larger ragged batch: exercises 2 "parallel" row tiles + a ragged last tile.
    x_large = jax.random.normal(kx2, (300, num_hiddens), jnp.float32)

    fwd_bf16 = jax.jit(functools.partial(custom_mlp_forward, prepared=prepared_bf16))
    fwd_f32 = jax.jit(functools.partial(custom_mlp_forward, prepared=prepared_f32))

    for x in (x_small, x_large):
        ref = custom_mlp_reference(x, params)

        out = jax.block_until_ready(fwd_bf16(x))
        assert out.shape == (x.shape[0], output_size), out.shape
        assert bool(jnp.all(jnp.isfinite(out)))
        assert bool(jnp.allclose(out, ref, rtol=6e-2, atol=6e-2)), (
            "bf16 mismatch", float(jnp.max(jnp.abs(out - ref))))

        out32 = jax.block_until_ready(fwd_f32(x))
        assert out32.shape == (x.shape[0], output_size), out32.shape
        assert bool(jnp.all(jnp.isfinite(out32)))
        assert bool(jnp.allclose(out32, ref, rtol=2e-2, atol=2e-2)), (
            "f32 mismatch", float(jnp.max(jnp.abs(out32 - ref))))

    print("KERNEL_OK")
</pallas_src>

<mosaic_0001>
module attributes {stable_mosaic.version = 11 : i64} {
  func.func @_custom_mlp_kernel(%arg0: i32, %arg1: i32, %arg2: memref<2x32xf32, #tpu.memory_space<vmem>>, %arg3: memref<32x128xbf16, #tpu.memory_space<vmem>>, %arg4: memref<1x128xf32, #tpu.memory_space<vmem>>, %arg5: memref<128x5xbf16, #tpu.memory_space<vmem>>, %arg6: memref<1x5xf32, #tpu.memory_space<vmem>>, %arg7: memref<2x5xf32, #tpu.memory_space<vmem>>, %arg8: memref<2x5xf32, #tpu.memory_space<vmem>>) attributes {dimension_semantics = [#tpu.dimension_semantics<parallel>, #tpu.dimension_semantics<arbitrary>], iteration_bounds = array<i64: 1, 1>, scalar_prefetch = 0 : i64, scratch_operands = 1 : i64, tpu.core_type = #tpu.core_type<tc>, window_params = [{transform_indices = @transform_0, window_bounds = array<i64: 2, 32>}, {transform_indices = @transform_1, window_bounds = array<i64: 32, 128>}, {transform_indices = @transform_2, window_bounds = array<i64: 1, 128>}, {transform_indices = @transform_3, window_bounds = array<i64: 128, 5>}, {pipeline_mode = #tpu.pipeline_mode<synchronous>, transform_indices = @transform_4, window_bounds = array<i64: 1, 5>}, {transform_indices = @transform_5, window_bounds = array<i64: 2, 5>}]} {
    %c0_i32 = arith.constant 0 : i32
    %0 = arith.cmpi eq, %arg1, %c0_i32 : i32
    %1 = arith.extui %0 : i1 to i32
    %c0_i32_0 = arith.constant 0 : i32
    %2 = arith.cmpi ne, %1, %c0_i32_0 : i32
    scf.if %2 {
      %cst_16 = arith.constant 0.000000e+00 : f32
      %21 = vector.broadcast %cst_16 : f32 to vector<2x5xf32>
      %c0_17 = arith.constant 0 : index
      %c0_18 = arith.constant 0 : index
      %22 = vector.load %arg8[%c0_17, %c0_18] : memref<2x5xf32, #tpu.memory_space<vmem>>, vector<2x5xf32>
      tpu.vector_store %arg8[%c0_17, %c0_18], %21 {strides = array<i32>} : memref<2x5xf32, #tpu.memory_space<vmem>>, vector<2x5xf32>,
    } else {
    }
    %c0 = arith.constant 0 : index
    %c0_1 = arith.constant 0 : index
    %3 = vector.load %arg2[%c0, %c0_1] : memref<2x32xf32, #tpu.memory_space<vmem>>, vector<2x32xf32>
    %4 = arith.truncf %3 : vector<2x32xf32> to vector<2x32xbf16>
    %c0_2 = arith.constant 0 : index
    %c0_3 = arith.constant 0 : index
    %5 = vector.load %arg3[%c0_2, %c0_3] : memref<32x128xbf16, #tpu.memory_space<vmem>>, vector<32x128xbf16>
    %cst = arith.constant dense<0.000000e+00> : vector<2x128xf32>
    %6 = tpu.matmul %4, %5, %cst {dimension_numbers = #tpu.dot_dimension_numbers<[1], [0], [0], [1], [0, 0, 1, 1], [], []>} : vector<2x32xbf16>, vector<32x128xbf16>, vector<2x128xf32> -> vector<2x128xf32>
    %c0_4 = arith.constant 0 : index
    %c0_5 = arith.constant 0 : index
    %7 = vector.load %arg4[%c0_4, %c0_5] : memref<1x128xf32, #tpu.memory_space<vmem>>, vector<1x128xf32>
    %8 = vector.broadcast %7 : vector<1x128xf32> to vector<2x128xf32>
    %9 = arith.addf %6, %8 : vector<2x128xf32>
    %cst_6 = arith.constant 0.000000e+00 : f32
    %10 = vector.broadcast %cst_6 : f32 to vector<2x128xf32>
    %11 = arith.maximumf %9, %10 : vector<2x128xf32>
    %c0_7 = arith.constant 0 : index
    %c0_8 = arith.constant 0 : index
    %12 = vector.load %arg8[%c0_7, %c0_8] : memref<2x5xf32, #tpu.memory_space<vmem>>, vector<2x5xf32>
    %13 = arith.truncf %11 : vector<2x128xf32> to vector<2x128xbf16>
    %c0_9 = arith.constant 0 : index
    %c0_10 = arith.constant 0 : index
    %14 = vector.load %arg5[%c0_9, %c0_10] : memref<128x5xbf16, #tpu.memory_space<vmem>>, vector<128x5xbf16>
    %cst_11 = arith.constant dense<0.000000e+00> : vector<2x5xf32>
    %15 = tpu.matmul %13, %14, %cst_11 {dimension_numbers = #tpu.dot_dimension_numbers<[1], [0], [0], [1], [0, 0, 1, 1], [], []>} : vector<2x128xbf16>, vector<128x5xbf16>, vector<2x5xf32> -> vector<2x5xf32>
    %16 = arith.addf %12, %15 : vector<2x5xf32>
    %c0_12 = arith.constant 0 : index
    %c0_13 = arith.constant 0 : index
    %17 = vector.load %arg8[%c0_12, %c0_13] : memref<2x5xf32, #tpu.memory_space<vmem>>, vector<2x5xf32>
    tpu.vector_store %arg8[%c0_12, %c0_13], %16 {strides = array<i32>} : memref<2x5xf32, #tpu.memory_space<vmem>>, vector<2x5xf32>,
    %c0_i32_14 = arith.constant 0 : i32
    %18 = arith.cmpi eq, %arg1, %c0_i32_14 : i32
    %19 = arith.extui %18 : i1 to i32
    %c0_i32_15 = arith.constant 0 : i32
    %20 = arith.cmpi ne, %19, %c0_i32_15 : i32
    scf.if %20 {
      %c0_16 = arith.constant 0 : index
      %c0_17 = arith.constant 0 : index
      %21 = vector.load %arg8[%c0_16, %c0_17] : memref<2x5xf32, #tpu.memory_space<vmem>>, vector<2x5xf32>
      %c0_18 = arith.constant 0 : index
      %c0_19 = arith.constant 0 : index
      %22 = vector.load %arg6[%c0_18, %c0_19] : memref<1x5xf32, #tpu.memory_space<vmem>>, vector<1x5xf32>
      %23 = vector.broadcast %22 : vector<1x5xf32> to vector<2x5xf32>
      %24 = arith.addf %21, %23 : vector<2x5xf32>
      %c0_20 = arith.constant 0 : index
      %c0_21 = arith.constant 0 : index
      %25 = vector.load %arg7[%c0_20, %c0_21] : memref<2x5xf32, #tpu.memory_space<vmem>>, vector<2x5xf32>
      tpu.vector_store %arg7[%c0_20, %c0_21], %24 {strides = array<i32>} : memref<2x5xf32, #tpu.memory_space<vmem>>, vector<2x5xf32>,
    } else {
    }
    return
  }
  func.func @transform_0(%arg0: i32, %arg1: i32) -> (i32, i32) {
    %c0_i32 = arith.constant 0 : i32
    %c0_i32_0 = arith.constant 0 : i32
    return %arg0, %c0_i32 : i32, i32
  }
  func.func @transform_1(%arg0: i32, %arg1: i32) -> (i32, i32) {
    %c0_i32 = arith.constant 0 : i32
    %c0_i32_0 = arith.constant 0 : i32
    return %c0_i32, %arg1 : i32, i32
  }
  func.func @transform_2(%arg0: i32, %arg1: i32) -> (i32, i32) {
    %c0_i32 = arith.constant 0 : i32
    %c0_i32_0 = arith.constant 0 : i32
    return %c0_i32, %arg1 : i32, i32
  }
  func.func @transform_3(%arg0: i32, %arg1: i32) -> (i32, i32) {
    %c0_i32 = arith.constant 0 : i32
    %c0_i32_0 = arith.constant 0 : i32
    return %arg1, %c0_i32 : i32, i32
  }
  func.func @transform_4(%arg0: i32, %arg1: i32) -> (i32, i32) {
    %c0_i32 = arith.constant 0 : i32
    %c0_i32_0 = arith.constant 0 : i32
    %c0_i32_1 = arith.constant 0 : i32
    return %c0_i32, %c0_i32_0 : i32, i32
  }
  func.func @transform_5(%arg0: i32, %arg1: i32) -> (i32, i32) {
    %c0_i32 = arith.constant 0 : i32
    %c0_i32_0 = arith.constant 0 : i32
    return %arg0, %c0_i32 : i32, i32
  }
}

</mosaic_0001>

<bundles_post_ra>
// kernel: custom_mlp_forward.1
= control target key start
LH: loop header
LB: loop body
LE: loop exit
PB: predicated region body
PF: predicated region fallthrough
CT: control target
= control target key end

     0   :  { %10 = vsyncpa [#allocation4], 0  ;;  %s486_s0 = inlined_call_operand.hbm [shape: f32[2,32], index: 0, kind: input, shape index: {}]   ;;  %s487_s1 = inlined_call_operand.hbm [shape: bf16[32,128], index: 1, kind: input, shape index: {}]   ;;  %s488_s2 = inlined_call_operand.hbm [shape: f32[1,128], index: 2, kind: input, shape index: {}]   ;;  %s489_s3 = inlined_call_operand.hbm [shape: bf16[128,5], index: 3, kind: input, shape index: {}]   ;;  %s490_s4 = inlined_call_operand.vmem [shape: f32[1,5], index: 4, kind: input, shape index: {}]   ;;  %s491_s5 = inlined_call_operand.hbm [shape: f32[2,5], index: 5, kind: output, shape index: {}]  }
   0x1   :  { %11 = vsyncpa [#allocation7], 0 }
   0x2   :  { %12 = vsyncpa [#allocation10], 0  ;;  %s29_s20 = sshll.u32 %s487_s1, 4  ;;  %s30_s20 = int_to_ptr.hbm [resolvable:$true] %s29_s20 }
   0x3   :  { %13 = vsyncpa [#allocation5], 0  ;;  %s427_s21 = smov [#allocation6]   ;;  %s19_s25 = sshll.u32 %s486_s0, 4  ;;  %s20_s25 = int_to_ptr.hbm [resolvable:$true] %s19_s25 }
   0x4   :  { %s31_s22 = sshll.u32 %s427_s21, 4  ;;  %s428_s26 = smov 64   ;;  %s32_s22 = int_to_ptr.vmem [resolvable:$true] %s31_s22 }
   0x5   :  { %s429_s27 = smov 4   ;;  %s430_s28 = smov [#allocation3]  }
   0x6   :  { %37 = dma.hbm_to_vmem [thread:$0]  %s30_s20, 256, %s32_s22, [#allocation7], %s428_s26, %s428_s26, %s429_s27  }
   0x7   :  { %s21_s29 = sshll.u32 %s430_s28, 4  ;;  %s43_s7 = sshll.u32 %s488_s2, 4  ;;  %s22_s29 = int_to_ptr.vmem [resolvable:$true] %s21_s29  ;;  %s44_s7 = int_to_ptr.hbm [resolvable:$true] %s43_s7 }
   0x8   :  { %24 = dma.hbm_to_vmem [thread:$0]  %s20_s25, 32, %s22_s29, [#allocation4]  }
   0x9   :  { %s53_s9 = sshll.u32 %s489_s3, 4  ;;  %s431_s10 = smov [#allocation8]   ;;  %s54_s9 = int_to_ptr.hbm [resolvable:$true] %s53_s9 }
   0xa   :  { %s45_s11 = sshll.u32 %s431_s10, 4  ;;  %s432_s0 = smov [#allocation9]   ;;  %s46_s11 = int_to_ptr.vmem [resolvable:$true] %s45_s11 }
   0xb   :  { %48 = dma.hbm_to_vmem [thread:$0]  %s44_s7, 16, %s46_s11, [#allocation7]  }
   0xc   :  { %s55_s12 = sshll.u32 %s432_s0, 4  ;;  %s56_s12 = int_to_ptr.vmem [resolvable:$true] %s55_s12 }
   0xd   :  { %61 = dma.hbm_to_vmem [thread:$0]  %s54_s9, 1024, %s56_s12, [#allocation10], %s428_s26, %s428_s26, %s429_s27  }
   0xe   :  { %419 = dma.done.wait [#allocation4], 32  }
   0xf   :  { %420 = vsyncadd [#allocation4], 4294967264 }
  0x10   :  { %421 = dma.done.wait [#allocation7], 272  }
  0x11   :  { %422 = vsyncadd [#allocation7], 4294967024 }
  0x12   :  { %423 = dma.done.wait [#allocation10], 1024  }
  0x13   :  { %424 = vsyncadd [#allocation10], 4294966272  ;;  %v280_v0 = vld [vmem:[#allocation6 + $0x8] sm:$0xff]  ;;  %v279_v2 = vld [vmem:[#allocation6] sm:$0xff]  ;;  %vm109_vm0 = vcmask 261120   ;;  %vm85_vm1 = vcmask 33792  }
  0x14   :  { %v288_v1 = vld [vmem:[#allocation9 + $0x38] sm:$0xff]  ;;  %119 = vmatpush.bf16.msra.mxu0 %v280_v0  ;;  %v87_v3 = vld [vmem:[#allocation3] sm:$0x3]  ;;  %v287_v4 = vld [vmem:[#allocation9 + $0x30] sm:$0xff]  ;;  %v433_v12 = vmov 0.0   ;;  %s434_s13 = smov [#allocation11]  }
  0x15   :  { %193 = vmatpush.bf16.msra.mxu1 %v288_v1  ;;  %v88_v5 = vpack.c.bf16 %v87_v3, %v87_v3  ;;  %v286_v6 = vld [vmem:[#allocation9 + $0x28] sm:$0xff]  ;;  %v285_v7 = vld [vmem:[#allocation9 + $0x20] sm:$0xff]  ;;  %v284_v8 = vld [vmem:[#allocation9 + $0x18] sm:$0xff]  ;;  %86 = vst.msk [vmem:[#allocation2] sm:$0x3] %vm85_vm1, %v433_v12  ;;  %s224_s14 = sshll.u32 %s434_s13, 4  ;;  %s225_s14 = int_to_ptr.vmem [resolvable:$true] %s224_s14 }
  0x16   :  { %v283_v9 = vld [vmem:[#allocation9 + $0x10] sm:$0xff]  ;;  %v282_v10 = vld [vmem:[#allocation9 + $0x8] sm:$0xff]  ;;  %v281_v11 = vld [vmem:[#allocation9] sm:$0xff]  ;;  %s226_s17 = sshll.u32 %s491_s5, 4  ;;  %s227_s17 = int_to_ptr.hbm [resolvable:$true] %s226_s17 }
  0x17   :  { %v297_v13 = vld [vmem:[#allocation8] ss:$0 sm:$0xff]  ;;  %v298_v22 = vld [vmem:[%s490_s4] ss:$0 sm:$0xff] }
  0x18   :  { %120 = vmatpush.bf16.msra.mxu0 %v279_v2 }
  0x19   :  { %194 = vmatpush.bf16.msra.mxu1 %v287_v4 }
  0x1b   :  { %246 = vmatmul.msk.bf16.vlgmr.msra.gmra.mxu0 %vm109_vm0, %v88_v5 }
  0x1c   :  { %v127_v19 = vld [vmem:[#allocation2] sm:$0x3] }
  0x1d   :  { %195 = vmatpush.bf16.msra.mxu1 %v286_v6 }
  0x21   :  { %196 = vmatpush.bf16.msra.mxu1 %v285_v7 }
  0x25   :  { %197 = vmatpush.bf16.msra.mxu1 %v284_v8 }
  0x29   :  { %198 = vmatpush.bf16.msra.mxu1 %v283_v9 }
  0x2d   :  { %199 = vmatpush.bf16.msra.mxu1 %v282_v10 }
  0x31   :  { %200 = vmatpush.bf16.msra.mxu1 %v281_v11 }
  0x98   :  { %v122_v14 = vpop.f32.mrf.mxu0 }
  0x99   :  { %v123_v15 = vadd.f32 %v297_v13, %v122_v14 }
  0x9b   :  { %v126_v16 = vmax.f32 %v123_v15, 0.0 }
  0x9d   :  { %v128_v17 = vpack.c.bf16 %v126_v16, %v126_v16 }
  0x9f   :  { %201 = vmatmul.bf16.vlgmr.msra.gmra.mxu1 %v128_v17 }
  0xa0   :  { %v124_v18 = vpop.f32.mrf.mxu0 }
 0x11c   :  { %v202_v20 = vpop.f32.mrf.mxu1 }
 0x11d   :  { %v206_v21 = vadd.f32 %v202_v20, %v127_v19 }
 0x11f   :  { %208 = vst.msk [vmem:[#allocation2] sm:$0x3] %vm85_vm1, %v206_v21 }
 0x124   :  { %v204_v23 = vpop.f32.mrf.mxu1 }
 0x126   :  { %v212_v24 = vld [vmem:[#allocation2] sm:$0x3] }
 0x127   :  { %v217_v25 = vadd.f32 %v298_v22, %v212_v24 }
 0x129   :  { %218 = vst.msk [vmem:[#allocation11] sm:$0x3] %vm85_vm1, %v217_v25 }
 0x12a   :  { %229 = dma.vmem_to_hbm [thread:$0]  %s225_s14, 32, %s227_s17, [#allocation5]  }
 0x12b   :  { %425 = dma.done.wait [#allocation5], 32  }
 0x12c   :  { %426 = vsyncadd [#allocation5], 4294967264 }
 0x12d   :  { %234 = vsyncpa [#allocation4], 1 }
 0x12e   :  { %235 = vsyncpa [#allocation7], 1 }
 0x12f   :  { %236 = vsyncpa [#allocation10], 1 }
 0x130   :  { %237 = vsyncpa [#allocation5], 1 }

</bundles_post_ra>
